<compile_context>
chip_gen: v7x
topology: tpu7x:2x2x1
jax: 0.10.0
libtpu: 0.0.40
codegen_flags: <defaults>
</compile_context>

<pallas_src>
import jax
import jax.numpy as jnp
from jax.experimental import pallas as pl
from jax.experimental.pallas import tpu as pltpu


# ---------------------------------------------------------------------------
# Kernel
# ---------------------------------------------------------------------------

def _pooler_kernel(h_ref, wp_ref, bp_ref, out_ref):
    # h_ref : (TB, TS, H) bf16  hidden-state tile (TB batch rows x TS seq rows)
    # wp_ref: (H, H)      bf16  pooler weight, pre-transposed (x @ wp == Linear)
    # bp_ref: (1, H)      f32   pooler bias
    # out_ref:(TB, H)     f32   per-batch SUM over S of tanh(h @ wp + bp),
    #                           accumulated across the S-tile grid axis.
    @pl.when(pl.program_id(1) == 0)
    def _init():
        out_ref[...] = jnp.zeros_like(out_ref)

    tb, ts, hdim = h_ref.shape
    h = h_ref[...].reshape(tb * ts, hdim)                    # bf16 MXU operand
    acts = jnp.dot(h, wp_ref[...], preferred_element_type=jnp.float32)
    acts = jnp.tanh(acts + bp_ref[...])                      # f32 bias + tanh
    out_ref[...] += acts.reshape(tb, ts, hdim).sum(axis=1)   # f32 S-sum accum


# ---------------------------------------------------------------------------
# Tile selection (VMEM-aware)
# ---------------------------------------------------------------------------

_VMEM_LIMIT_BYTES = 48 * 1024 * 1024   # raised scoped-VMEM limit (safe on v5e/v6e/v7x)
_TILE_VMEM_BUDGET = 36 * 1024 * 1024   # per-step budget with headroom under the limit
_TARGET_ROWS = 2048                    # MXU rows (TB*TS) per grid step


def _tile_vmem_bytes(tb, ts, hidden):
    rows = tb * ts
    return (2 * rows * hidden * 2        # double-buffered bf16 hidden tile
            + 2 * hidden * hidden * 2    # double-buffered bf16 weight (constant block)
            + hidden * 4                 # bias
            + rows * hidden * 4          # f32 activation temporary
            + 2 * tb * hidden * 4)       # f32 output accumulator block


def _pick_tiles(batch, seq, hidden,
                target_rows=_TARGET_ROWS, vmem_budget=_TILE_VMEM_BUDGET):
    """Pick (TB, TS): both divide their dims, are sublane-legal (==dim or %8==0),
    fit the VMEM budget, and approach `target_rows` MXU rows per step.  Prefer
    leaving >=2 batch tiles so the megacore-parallel axis can split across TCs."""
    tb_opts = [d for d in range(1, batch + 1)
               if batch % d == 0 and (d == batch or d % 8 == 0)]
    ts_opts = [d for d in range(1, seq + 1)
               if seq % d == 0 and (d == seq or d % 8 == 0)]
    fitting = [(tb, ts) for tb in tb_opts for ts in ts_opts
               if _tile_vmem_bytes(tb, ts, hidden) <= vmem_budget]
    if not fitting:                      # pathological shapes: smallest legal tile
        return min(tb_opts), min(ts_opts)
    under = [c for c in fitting if c[0] * c[1] <= target_rows]
    if under:
        return max(under, key=lambda c: (batch // c[0] >= 2, c[0] * c[1], c[1]))
    return min(fitting, key=lambda c: (c[0] * c[1], -c[1]))


# ---------------------------------------------------------------------------
# Head wrapper (Pallas pooler + tiny JAX classifier)
# ---------------------------------------------------------------------------

def bert_head(hidden_bf16, wp_t_bf16, bp_f32, w_cls, b_cls):
    """hidden_bf16: [B, S, H] bf16.  wp_t_bf16: [H, H] (pre-transposed, x @ wp_t).
    bp_f32: [1, H] f32.  w_cls: [2, H] f32.  b_cls: [2] f32."""
    B, S, H = hidden_bf16.shape
    TB, TS = _pick_tiles(B, S, H)

    pooled_sum = pl.pallas_call(
        _pooler_kernel,
        out_shape=jax.ShapeDtypeStruct((B, H), jnp.float32),
        grid_spec=pltpu.PrefetchScalarGridSpec(
            num_scalar_prefetch=0,
            grid=(B // TB, S // TS),          # reduction (S) axis last
            in_specs=[
                pl.BlockSpec((TB, TS, H), lambda i, j: (i, j, 0)),
                pl.BlockSpec((H, H), lambda i, j: (0, 0)),
                pl.BlockSpec((1, H), lambda i, j: (0, 0)),
            ],
            out_specs=pl.BlockSpec((TB, H), lambda i, j: (i, 0)),
        ),
        compiler_params=pltpu.CompilerParams(
            dimension_semantics=("parallel", "arbitrary"),
            vmem_limit_bytes=_VMEM_LIMIT_BYTES,
        ),
    )(hidden_bf16, wp_t_bf16, bp_f32)

    # Dropout(0.2) is identity at eval.  The tiny [B,H]@[H,2] classifier runs in
    # plain JAX (M=B, N=2 in-kernel would burn an MXU pass + lane-sparse stores);
    # the 1/S mean scale is folded into the classifier weight.
    wc_scaled = (w_cls.T / float(S)).astype(jnp.float32)      # [H, 2]
    return pooled_sum @ wc_scaled + b_cls.reshape(1, 2)        # [B, 2]


# ---------------------------------------------------------------------------
# Backbone stand-in (produces bf16 hidden states at the source)
# ---------------------------------------------------------------------------

def backbone_stub(input_ids, attention_mask, emb_table):
    """Deterministic stand-in for the pretrained NEZHA BertModel.
    emb_table is stored bf16 so the produced hidden states are bf16 with no
    extra f32->bf16 HBM pass.  Masked positions are zeroed."""
    hidden = emb_table[input_ids]                              # [B, S, H] bf16
    return hidden * attention_mask[..., None].astype(hidden.dtype)


def mybert_v1_forward(input_ids, attention_mask, params):
    hidden = backbone_stub(input_ids, attention_mask, params["emb_table"])
    return bert_head(hidden, params["wp_t"], params["bp"],
                     params["w_cls"], params["b_cls"])


# ---------------------------------------------------------------------------
# Self-test
# ---------------------------------------------------------------------------

if __name__ == "__main__":
    # Small shapes; H kept a multiple of 256 so one 256x256 MXU pass is full
    # on v6e/v7x (real NEZHA H=768 also satisfies this).
    B, S, H = 2, 8, 256
    VOCAB = 64

    key = jax.random.PRNGKey(0)
    k_emb, k_wp, k_bp, k_wc, k_bc, k_ids = jax.random.split(key, 6)

    emb_f32 = jax.random.normal(k_emb, (VOCAB, H), jnp.float32) * 0.02
    w_pool = jax.random.normal(k_wp, (H, H), jnp.float32) * 0.02   # nn.Linear(H,H).weight
    b_pool = jax.random.normal(k_bp, (H,), jnp.float32) * 0.02
    w_cls = jax.random.normal(k_wc, (2, H), jnp.float32) * 0.02    # nn.Linear(H,2).weight
    b_cls = jax.random.normal(k_bc, (2,), jnp.float32) * 0.02

    # Weights stored in kernel-ready layout/dtype once (no per-forward transpose/cast).
    params = {
        "emb_table": emb_f32.astype(jnp.bfloat16),
        "wp_t": w_pool.T.astype(jnp.bfloat16),        # [H, H], x @ wp_t == Linear
        "bp": b_pool.reshape(1, H).astype(jnp.float32),
        "w_cls": w_cls,
        "b_cls": b_cls,
    }

    input_ids = jax.random.randint(k_ids, (B, S), 0, VOCAB, dtype=jnp.int32)
    attention_mask = jnp.ones((B, S), jnp.int32).at[:, -2:].set(0)

    logits = mybert_v1_forward(input_ids, attention_mask, params)
    logits = jax.block_until_ready(logits)
    assert logits.shape == (B, 2) and logits.dtype == jnp.float32

    # Reference 1: bf16-matched math (same matmul precision as the kernel).
    hidden_bf = backbone_stub(input_ids, attention_mask, params["emb_table"])
    acts = jnp.dot(hidden_bf.reshape(B * S, H), params["wp_t"],
                   preferred_element_type=jnp.float32).reshape(B, S, H)
    pooled = jnp.mean(jnp.tanh(acts + b_pool), axis=1)
    ref = pooled @ w_cls.T + b_cls
    assert jnp.allclose(logits, ref, atol=1e-4), "mismatch vs bf16-matched ref"

    # Reference 2: full-f32 math (original module semantics), loose tolerance
    # for the bf16 hidden/weight operands.
    hidden32 = emb_f32[input_ids] * attention_mask[..., None].astype(jnp.float32)
    pooled32 = jnp.tanh(jnp.einsum("bsh,oh->bso", hidden32, w_pool) + b_pool)
    ref32 = jnp.mean(pooled32, axis=1) @ w_cls.T + b_cls
    assert jnp.allclose(logits, ref32, atol=2e-3), "mismatch vs f32 ref"

    print("KERNEL_OK")
</pallas_src>

<mosaic_0001>
module attributes {stable_mosaic.version = 11 : i64} {
  func.func @_pooler_kernel(%arg0: i32, %arg1: i32, %arg2: memref<2x8x256xbf16, #tpu.memory_space<vmem>>, %arg3: memref<256x256xbf16, #tpu.memory_space<vmem>>, %arg4: memref<1x256xf32, #tpu.memory_space<vmem>>, %arg5: memref<2x256xf32, #tpu.memory_space<vmem>>) attributes {dimension_semantics = [#tpu.dimension_semantics<parallel>, #tpu.dimension_semantics<arbitrary>], iteration_bounds = array<i64: 1, 1>, scalar_prefetch = 0 : i64, scratch_operands = 0 : i64, tpu.core_type = #tpu.core_type<tc>, window_params = [{transform_indices = @transform_0, window_bounds = array<i64: 2, 8, 256>}, {pipeline_mode = #tpu.pipeline_mode<synchronous>, transform_indices = @transform_1, window_bounds = array<i64: 256, 256>}, {pipeline_mode = #tpu.pipeline_mode<synchronous>, transform_indices = @transform_2, window_bounds = array<i64: 1, 256>}, {transform_indices = @transform_3, window_bounds = array<i64: 2, 256>}]} {
    %c0_i32 = arith.constant 0 : i32
    %0 = arith.cmpi eq, %arg1, %c0_i32 : i32
    %1 = arith.extui %0 : i1 to i32
    %c0_i32_0 = arith.constant 0 : i32
    %2 = arith.cmpi ne, %1, %c0_i32_0 : i32
    scf.if %2 {
      %cst_12 = arith.constant 0.000000e+00 : f32
      %16 = vector.broadcast %cst_12 : f32 to vector<2x256xf32>
      %c0_13 = arith.constant 0 : index
      %c0_14 = arith.constant 0 : index
      %17 = vector.load %arg5[%c0_13, %c0_14] : memref<2x256xf32, #tpu.memory_space<vmem>>, vector<2x256xf32>
      tpu.vector_store %arg5[%c0_13, %c0_14], %16 {strides = array<i32>} : memref<2x256xf32, #tpu.memory_space<vmem>>, vector<2x256xf32>,
    } else {
    }
    %c0 = arith.constant 0 : index
    %c0_1 = arith.constant 0 : index
    %c0_2 = arith.constant 0 : index
    %3 = vector.load %arg2[%c0, %c0_1, %c0_2] : memref<2x8x256xbf16, #tpu.memory_space<vmem>>, vector<2x8x256xbf16>
    %4 = vector.shape_cast %3 : vector<2x8x256xbf16> to vector<16x256xbf16>
    %c0_3 = arith.constant 0 : index
    %c0_4 = arith.constant 0 : index
    %5 = vector.load %arg3[%c0_3, %c0_4] : memref<256x256xbf16, #tpu.memory_space<vmem>>, vector<256x256xbf16>
    %cst = arith.constant dense<0.000000e+00> : vector<16x256xf32>
    %6 = tpu.matmul %4, %5, %cst {dimension_numbers = #tpu.dot_dimension_numbers<[1], [0], [0], [1], [0, 0, 1, 1], [], []>} : vector<16x256xbf16>, vector<256x256xbf16>, vector<16x256xf32> -> vector<16x256xf32>
    %c0_5 = arith.constant 0 : index
    %c0_6 = arith.constant 0 : index
    %7 = vector.load %arg4[%c0_5, %c0_6] : memref<1x256xf32, #tpu.memory_space<vmem>>, vector<1x256xf32>
    %8 = vector.broadcast %7 : vector<1x256xf32> to vector<16x256xf32>
    %9 = arith.addf %6, %8 : vector<16x256xf32>
    %10 = math.tanh %9 : vector<16x256xf32>
    %c0_7 = arith.constant 0 : index
    %c0_8 = arith.constant 0 : index
    %11 = vector.load %arg5[%c0_7, %c0_8] : memref<2x256xf32, #tpu.memory_space<vmem>>, vector<2x256xf32>
    %12 = vector.shape_cast %10 : vector<16x256xf32> to vector<2x8x256xf32>
    %cst_9 = arith.constant dense<0.000000e+00> : vector<2x256xf32>
    %13 = vector.multi_reduction <add>, %12, %cst_9 [1] : vector<2x8x256xf32> to vector<2x256xf32>
    %14 = arith.addf %11, %13 : vector<2x256xf32>
    %c0_10 = arith.constant 0 : index
    %c0_11 = arith.constant 0 : index
    %15 = vector.load %arg5[%c0_10, %c0_11] : memref<2x256xf32, #tpu.memory_space<vmem>>, vector<2x256xf32>
    tpu.vector_store %arg5[%c0_10, %c0_11], %14 {strides = array<i32>} : memref<2x256xf32, #tpu.memory_space<vmem>>, vector<2x256xf32>,
    return
  }
  func.func @transform_0(%arg0: i32, %arg1: i32) -> (i32, i32, i32) {
    %c0_i32 = arith.constant 0 : i32
    %c0_i32_0 = arith.constant 0 : i32
    return %arg0, %arg1, %c0_i32 : i32, i32, i32
  }
  func.func @transform_1(%arg0: i32, %arg1: i32) -> (i32, i32) {
    %c0_i32 = arith.constant 0 : i32
    %c0_i32_0 = arith.constant 0 : i32
    %c0_i32_1 = arith.constant 0 : i32
    return %c0_i32, %c0_i32_0 : i32, i32
  }
  func.func @transform_2(%arg0: i32, %arg1: i32) -> (i32, i32) {
    %c0_i32 = arith.constant 0 : i32
    %c0_i32_0 = arith.constant 0 : i32
    %c0_i32_1 = arith.constant 0 : i32
    return %c0_i32, %c0_i32_0 : i32, i32
  }
  func.func @transform_3(%arg0: i32, %arg1: i32) -> (i32, i32) {
    %c0_i32 = arith.constant 0 : i32
    %c0_i32_0 = arith.constant 0 : i32
    return %arg0, %c0_i32 : i32, i32
  }
}

</mosaic_0001>

<bundles_post_ra>
// kernel: tpu_custom_call.1
= control target key start
LH: loop header
LB: loop body
LE: loop exit
PB: predicated region body
PF: predicated region fallthrough
CT: control target
= control target key end

     0   :  { %8 = vsyncpa [#allocation3], 0  ;;  %s626_s0 = inlined_call_operand.hbm [shape: bf16[2,8,256], index: 0, kind: input, shape index: {}]   ;;  %s627_s1 = inlined_call_operand.hbm [shape: bf16[256,256], index: 1, kind: input, shape index: {}]   ;;  %s628_s2 = inlined_call_operand.vmem [shape: f32[1,256], index: 2, kind: input, shape index: {}]   ;;  %s629_s3 = inlined_call_operand.hbm [shape: f32[2,256], index: 3, kind: output, shape index: {}]  }
   0x1   :  { %9 = vsyncpa [#allocation6], 0 }
   0x2   :  { %10 = vsyncpa [#allocation4], 0  ;;  %s560_s12 = smov [#allocation2]   ;;  %s488_s16 = scalar_lea.hbm %s626_s0, 256 }
   0x3   :  { %s16_s13 = sshll.u32 %s560_s12, 4  ;;  %p489_p0 = scmp.ne.s32.totalorder %s626_s0, %s488_s16  ;;  %s17_s13 = int_to_ptr.vmem [resolvable:$true] %s16_s13 }
   0x4   :  { %p492_p1 = scmp.lt.u32.totalorder %s488_s16, %s626_s0 }
   0x6   :  { %p494_p2 = pnand %p492_p1, %p489_p0 }
   0x8   :  { %497 = shalt.err (!%p494_p2)
}
   0x9   :  { %s498_s21 = scalar_lea.vmem %s17_s13, 256  ;;  %p503_p4 = scmp.lt.s32.totalorder %s17_s13, %s17_s13 }
   0xa   :  { %p499_p3 = scmp.ne.s32.totalorder %s17_s13, %s498_s21  ;;  %p504_p5 = scmp.lt.s32.totalorder %s498_s21, %s498_s21 }
   0xc   :  { %p505_p6 = por %p504_p5, %p503_p4 }
   0xe   :  { %p506_p7 = pnand %p505_p6, %p499_p3 }
  0x10   :  { %509 = shalt.err (!%p506_p7)
}
  0x11   :  { %s561_s22 = smov 128   ;;  %s562_s23 = smov 8  }
  0x12   :  { %22 = dma.hbm_to_vmem [thread:$0]  %s626_s0, 256, %s17_s13, [#allocation3], %s561_s22, %s561_s22, %s562_s23  }
  0x13   :  { %s563_s26 = smov [#allocation5]   ;;  %s510_s30 = scalar_lea.hbm %s627_s1, 4096 }
  0x14   :  { %s28_s27 = sshll.u32 %s563_s26, 4  ;;  %p511_p8 = scmp.ne.s32.totalorder %s627_s1, %s510_s30  ;;  %s29_s27 = int_to_ptr.vmem [resolvable:$true] %s28_s27 }
  0x15   :  { %p514_p9 = scmp.lt.u32.totalorder %s510_s30, %s627_s1 }
  0x17   :  { %p516_p10 = pnand %p514_p9, %p511_p8 }
  0x19   :  { %519 = shalt.err (!%p516_p10)
}
  0x1a   :  { %s520_s8 = scalar_lea.vmem %s29_s27, 4096  ;;  %p525_p12 = scmp.lt.s32.totalorder %s29_s27, %s29_s27 }
  0x1b   :  { %p521_p11 = scmp.ne.s32.totalorder %s29_s27, %s520_s8  ;;  %p526_p13 = scmp.lt.s32.totalorder %s520_s8, %s520_s8 }
  0x1d   :  { %p527_p0 = por %p526_p13, %p525_p12 }
  0x1f   :  { %p528_p1 = pnand %p527_p0, %p521_p11 }
  0x21   :  { %531 = shalt.err (!%p528_p1)
}
  0x22   :  { %34 = dma.hbm_to_vmem [thread:$0]  %s627_s1, 4096, %s29_s27, [#allocation6], %s561_s22, %s561_s22, %s562_s23  }
  0x23   :  { %554 = dma.done.wait [#allocation3], 256  }
  0x24   :  { %555 = vsyncadd [#allocation3], 4294967040 }
  0x25   :  { %556 = dma.done.wait [#allocation6], 4096  }
  0x26   :  { %557 = vsyncadd [#allocation6], 4294963200  ;;  %v429_v0 = vld [vmem:[#allocation5 + $0x4] ss:$8 sps:$4 sm:$0xff]   ;;  %v431_v1 = vld [vmem:[#allocation5] ss:$8 sps:$4 sm:$0xff]   ;;  %v84_v35 = vlaneseq }
  0x27   :  { %264 = vmatprep.subr.bf16.mxu0 %v429_v0  ;;  %v432_v2 = vld [vmem:[#allocation5 + $0x14] ss:$8 sps:$4 sm:$0xff]   ;;  %v434_v3 = vld [vmem:[#allocation5 + $0x10] ss:$8 sps:$4 sm:$0xff]   ;;  %v435_v4 = vld [vmem:[#allocation5 + $0x24] ss:$8 sps:$4 sm:$0xff]  }
  0x28   :  { %265 = vmatpush1.bf16.msra.mxu0 %v431_v1  ;;  %v437_v5 = vld [vmem:[#allocation5 + $0x20] ss:$8 sps:$4 sm:$0xff]   ;;  %v438_v6 = vld [vmem:[#allocation5 + $0x34] ss:$8 sps:$4 sm:$0xff]   ;;  %v440_v7 = vld [vmem:[#allocation5 + $0x30] ss:$8 sps:$4 sm:$0xff]  }
  0x29   :  { %266 = vmatprep.subr.bf16.mxu0 %v432_v2  ;;  %v441_v8 = vld [vmem:[#allocation5 + $0x44] ss:$8 sps:$4 sm:$0xff]   ;;  %v443_v9 = vld [vmem:[#allocation5 + $0x40] ss:$8 sps:$4 sm:$0xff]   ;;  %v444_v10 = vld [vmem:[#allocation5 + $0x54] ss:$8 sps:$4 sm:$0xff]  }
  0x2a   :  { %v446_v11 = vld [vmem:[#allocation5 + $0x50] ss:$8 sps:$4 sm:$0xff]   ;;  %v447_v12 = vld [vmem:[#allocation5 + $0x64] ss:$8 sps:$4 sm:$0xff]   ;;  %v479_v13 = vld [vmem:[#allocation2 + $0x4] ss:$8 sps:$4 sm:$0xff]  }
  0x2b   :  { %v449_v14 = vld [vmem:[#allocation5 + $0x60] ss:$8 sps:$4 sm:$0xff]   ;;  %v450_v15 = vld [vmem:[#allocation5 + $0x74] ss:$8 sps:$4 sm:$0xff]   ;;  %296 = vmatprep.mubr.bf16.mxu0 %v479_v13  ;;  %v452_v16 = vld [vmem:[#allocation5 + $0x70] ss:$8 sps:$4 sm:$0xff]  }
  0x2c   :  { %267 = vmatpush1.bf16.msra.mxu0 %v434_v3  ;;  %v453_v17 = vld [vmem:[#allocation5 + $0x84] ss:$8 sps:$4 sm:$0xff]   ;;  %v455_v18 = vld [vmem:[#allocation5 + $0x80] ss:$8 sps:$4 sm:$0xff]   ;;  %v456_v19 = vld [vmem:[#allocation5 + $0x94] ss:$8 sps:$4 sm:$0xff]  }
  0x2d   :  { %268 = vmatprep.subr.bf16.mxu0 %v435_v4  ;;  %v458_v20 = vld [vmem:[#allocation5 + $0x90] ss:$8 sps:$4 sm:$0xff]   ;;  %v459_v21 = vld [vmem:[#allocation5 + $0xa4] ss:$8 sps:$4 sm:$0xff]   ;;  %v461_v22 = vld [vmem:[#allocation5 + $0xa0] ss:$8 sps:$4 sm:$0xff]  }
  0x2e   :  { %v462_v23 = vld [vmem:[#allocation5 + $0xb4] ss:$8 sps:$4 sm:$0xff]   ;;  %v464_v24 = vld [vmem:[#allocation5 + $0xb0] ss:$8 sps:$4 sm:$0xff]   ;;  %v465_v25 = vld [vmem:[#allocation5 + $0xc4] ss:$8 sps:$4 sm:$0xff]  }
  0x2f   :  { %v467_v26 = vld [vmem:[#allocation5 + $0xc0] ss:$8 sps:$4 sm:$0xff]   ;;  %v468_v27 = vld [vmem:[#allocation5 + $0xd4] ss:$8 sps:$4 sm:$0xff]   ;;  %v470_v28 = vld [vmem:[#allocation5 + $0xd0] ss:$8 sps:$4 sm:$0xff]  }
  0x30   :  { %269 = vmatpush1.bf16.msra.mxu0 %v437_v5  ;;  %v471_v29 = vld [vmem:[#allocation5 + $0xe4] ss:$8 sps:$4 sm:$0xff]   ;;  %v473_v30 = vld [vmem:[#allocation5 + $0xe0] ss:$8 sps:$4 sm:$0xff]   ;;  %v474_v31 = vld [vmem:[#allocation5 + $0xf4] ss:$8 sps:$4 sm:$0xff]  }
  0x31   :  { %270 = vmatprep.subr.bf16.mxu0 %v438_v6  ;;  %v476_v32 = vld [vmem:[#allocation5 + $0xf0] ss:$8 sps:$4 sm:$0xff]   ;;  %v564_v34 = vmov 0.0   ;;  %v85_v36 = vshrl.u32 %v84_v35, 7  ;;  %v565_v2 = vmov 1983009808  }
  0x32   :  { %v477_v33 = vld [vmem:[#allocation2] ss:$8 sps:$4 sm:$0xff]   ;;  %47 = vst [vmem:[#allocation7] sm:$0xf] %v564_v34  ;;  %v342_v3 = vunpack.c.l.s4 %v565_v2  ;;  %vm361_vm0 = vcmask 1041409   ;;  %vm363_vm1 = vcmask 1043459  }
  0x33   :  { %v86_v37 = vsub.s32 0, %v85_v36  ;;  %v82_v38 = vld [vmem:[%s628_s2] sm:$0x3]  ;;  %v90_v39 = vsub.s32 1, %v85_v36  ;;  %vm365_vm2 = vcmask 1045509   ;;  %vm367_vm3 = vcmask 1047559  }
  0x34   :  { %271 = vmatpush1.bf16.msra.mxu0 %v440_v7  ;;  %s566_s2 = smov [#allocation7]  }
  0x35   :  { %272 = vmatprep.subr.bf16.mxu0 %v441_v8  ;;  %v87_v40 = vrot.slane %v82_v38, %v86_v37  ;;  %v91_v41 = vrot.slane %v82_v38, %v90_v39  ;;  %s378_s11 = sshll.u32 %s566_s2, 4  ;;  %s379_s11 = int_to_ptr.vmem [resolvable:$true] %s378_s11 }
  0x36   :  { %s532_s12 = scalar_lea.vmem %s379_s11, 64  ;;  %p537_p3 = scmp.lt.s32.totalorder %s379_s11, %s379_s11 }
  0x37   :  { %p533_p2 = scmp.ne.s32.totalorder %s379_s11, %s532_s12  ;;  %p538_p4 = scmp.lt.s32.totalorder %s532_s12, %s532_s12 }
  0x38   :  { %273 = vmatpush1.bf16.msra.mxu0 %v443_v9 }
  0x39   :  { %274 = vmatprep.subr.bf16.mxu0 %v444_v10  ;;  %p539_p5 = por %p538_p4, %p537_p3 }
  0x3b   :  { %p540_p6 = pnand %p539_p5, %p533_p2 }
  0x3c   :  { %275 = vmatpush1.bf16.msra.mxu0 %v446_v11 }
  0x3d   :  { %276 = vmatprep.subr.bf16.mxu0 %v447_v12  ;;  %v343_v12 = vunpack.c.0.s8 %v342_v3 }
  0x40   :  { %277 = vmatpush1.bf16.msra.mxu0 %v449_v14 }
  0x41   :  { %278 = vmatprep.subr.bf16.mxu0 %v450_v15 }
  0x44   :  { %279 = vmatpush1.bf16.msra.mxu0 %v452_v16 }
  0x45   :  { %280 = vmatprep.subr.bf16.mxu0 %v453_v17 }
  0x48   :  { %281 = vmatpush1.bf16.msra.mxu0 %v455_v18  ;;  %v346_v18 = vsub.s32 %v343_v12, %v85_v36 }
  0x49   :  { %282 = vmatprep.subr.bf16.mxu0 %v456_v19 }
  0x4c   :  { %283 = vmatpush1.bf16.msra.mxu0 %v458_v20 }
  0x4d   :  { %284 = vmatprep.subr.bf16.mxu0 %v459_v21 }
  0x50   :  { %285 = vmatpush1.bf16.msra.mxu0 %v461_v22 }
  0x51   :  { %286 = vmatprep.subr.bf16.mxu0 %v462_v23 }
  0x54   :  { %287 = vmatpush1.bf16.msra.mxu0 %v464_v24  ;;  %v311_v24 = vld [vmem:[#allocation7] sm:$0xf] }
  0x55   :  { %288 = vmatprep.subr.bf16.mxu0 %v465_v25 }
  0x58   :  { %289 = vmatpush1.bf16.msra.mxu0 %v467_v26 }
  0x59   :  { %290 = vmatprep.subr.bf16.mxu0 %v468_v27 }
  0x5c   :  { %291 = vmatpush1.bf16.msra.mxu0 %v470_v28 }
  0x5d   :  { %292 = vmatprep.subr.bf16.mxu0 %v471_v29 }
  0x60   :  { %293 = vmatpush1.bf16.msra.mxu0 %v473_v30 }
  0x61   :  { %294 = vmatprep.subr.bf16.mxu0 %v474_v31 }
  0x64   :  { %295 = vmatpush1.bf16.msra.mxu0 %v476_v32 }
  0x67   :  { %297 = vmatmul.mubr.bf16.vlgmr.msra.gmra.mrb[0].mxu0 %v477_v33 }
 0x13a   :  { %v298_v42 = vpop.f32.mrb[0].mxu0 }
 0x13b   :  { %v299_v43 = vadd.f32 %v298_v42, %v87_v40  ;;  %v300_v44 = vpop.f32.mrb[1].mxu0 }
 0x13c   :  { %v301_v45 = vadd.f32 %v300_v44, %v91_v41  ;;  %v302_v46 = vpop.f32.mrb[2].mxu0 }
 0x13d   :  { %480 = vtanh.f32 %v299_v43  ;;  %v303_v47 = vadd.f32 %v302_v46, %v87_v40  ;;  %v304_v48 = vpop.f32.mrb[3].mxu0 }
 0x13e   :  { %482 = vtanh.f32 %v301_v45  ;;  %v305_v49 = vadd.f32 %v304_v48, %v91_v41 }
 0x13f   :  { %484 = vtanh.f32 %v303_v47 }
 0x140   :  { %486 = vtanh.f32 %v305_v49 }
 0x147   :  { %v481_v50 = vpop.eup %480 }
 0x148   :  { %v483_v51 = vpop.eup %482  ;;  %v312_v52 = vrot.slane %v481_v50, 4 }
 0x149   :  { %v485_v53 = vpop.eup %484  ;;  %v318_v54 = vrot.slane %v483_v51, 4 }
 0x14a   :  { %v487_v55 = vpop.eup %486  ;;  %v313_v56 = vadd.f32 %v481_v50, %v312_v52  ;;  %v324_v57 = vrot.slane %v485_v53, 4 }
 0x14b   :  { %v319_v58 = vadd.f32 %v483_v51, %v318_v54  ;;  %v330_v59 = vrot.slane %v487_v55, 4 }
 0x14c   :  { %v314_v60 = vrot.slane %v313_v56, 2  ;;  %v325_v61 = vadd.f32 %v485_v53, %v324_v57 }
 0x14d   :  { %v320_v62 = vrot.slane %v319_v58, 2  ;;  %v331_v63 = vadd.f32 %v487_v55, %v330_v59 }
 0x14e   :  { %v315_v0 = vadd.f32 %v314_v60, %v313_v56  ;;  %v326_v1 = vrot.slane %v325_v61, 2 }
 0x14f   :  { %v321_v4 = vadd.f32 %v320_v62, %v319_v58  ;;  %v332_v5 = vrot.slane %v331_v63, 2 }
 0x150   :  { %v316_v6 = vrot.slane %v315_v0, 1  ;;  %v327_v7 = vadd.f32 %v326_v1, %v325_v61 }
 0x151   :  { %v322_v8 = vrot.slane %v321_v4, 1  ;;  %v333_v9 = vadd.f32 %v332_v5, %v331_v63 }
 0x152   :  { %v317_v10 = vadd.f32 %v316_v6, %v315_v0  ;;  %v328_v11 = vrot.slane %v327_v7, 1 }
 0x153   :  { %v323_v13 = vadd.f32 %v322_v8, %v321_v4  ;;  %v334_v14 = vrot.slane %v333_v9, 1 }
 0x154   :  { %v329_v15 = vadd.f32 %v328_v11, %v327_v7 }
 0x155   :  { %v340_v16 = vcombine.low %v317_v10, %v323_v13  ;;  %v335_v17 = vadd.f32 %v334_v14, %v333_v9 }
 0x157   :  { %v348_v19 = vcombine.low %v329_v15, %v335_v17  ;;  %v347_v21 = vrot.slane %v340_v16, %v346_v18 }
 0x159   :  { %v355_v20 = vrot.slane %v348_v19, %v346_v18 }
 0x15b   :  { %v360_v22 = vrot.slane %v355_v20, 7 }
 0x15d   :  { %v362_v23 = vsel %vm361_vm0, %v360_v22, %v347_v21 }
 0x15e   :  { %v364_v25 = vsel %vm363_vm1, %v360_v22, %v362_v23 }
 0x15f   :  { %v366_v26 = vsel %vm365_vm2, %v360_v22, %v364_v25 }
 0x160   :  { %v368_v27 = vsel %vm367_vm3, %v360_v22, %v366_v26 }
 0x161   :  { %v370_v28 = vadd.f32 %v368_v27, %v311_v24 }
 0x163   :  { %371 = vst [vmem:[#allocation7] sm:$0xf] %v370_v28 }
 0x164   :  { %543 = shalt.err (!%p540_p6)
}
 0x165   :  { %s544_s15 = scalar_lea.hbm %s629_s3, 64 }
 0x166   :  { %p545_p7 = scmp.ne.s32.totalorder %s629_s3, %s544_s15  ;;  %p548_p8 = scmp.lt.u32.totalorder %s544_s15, %s629_s3 }
 0x168   :  { %p550_p9 = pnand %p548_p8, %p545_p7 }
 0x16a   :  { %553 = shalt.err (!%p550_p9)
}
 0x16b   :  { %381 = dma.vmem_to_hbm [thread:$0]  %s379_s11, 64, %s629_s3, [#allocation4]  }
 0x16c   :  { %558 = dma.done.wait [#allocation4], 64  }
 0x16d   :  { %559 = vsyncadd [#allocation4], 4294967232 }
 0x16e   :  { %385 = vsyncpa [#allocation3], 1 }
 0x16f   :  { %386 = vsyncpa [#allocation6], 1 }
 0x170   :  { %387 = vsyncpa [#allocation4], 1 }

</bundles_post_ra>
